<compile_context>
chip_gen: v5e
topology: v5e:2x2
jax: 0.10.0
libtpu: 0.0.40
codegen_flags: <defaults>
</compile_context>

<pallas_src>
import functools

import jax
import jax.numpy as jnp
from jax import lax
from jax.experimental import pallas as pl
from jax.experimental.pallas import tpu as pltpu


def lstm_doc_kernel(x_ref,        # VMEM (T, E)   bf16 gathered embedding rows
                    w_ih_t_ref,   # VMEM (E, 4H)  bf16 pre-transposed, gate order i,f,g,o
                    w_hh_t_ref,   # VMEM (H, 4H)  bf16 pre-transposed
                    bias_ref,     # VMEM (1, 4H)  f32  b_ih + b_hh
                    w_out_t_ref,  # VMEM (H, L)   bf16 pre-transposed
                    b_out_ref,    # VMEM (1, L)   f32
                    out_ref,      # VMEM (1, L)   f32
                    gx_ref,       # VMEM scratch (T, 4H) f32: x_t @ W_ih^T + b (all t)
                    h_all_ref,    # VMEM scratch (T, H)  f32: hidden state history
                    *, hidden_dim, seq_len, unroll):
    H = hidden_dim

    # --- Hoisted input projection: one dense bf16 MXU matmul for ALL timesteps --------
    gx_ref[...] = (jnp.dot(x_ref[...], w_ih_t_ref[...],
                           preferred_element_type=jnp.float32)
                   + bias_ref[...])                                       # (T, 4H) f32

    # Hoist the recurrent weight read once (single (H,4H) bf16 tile stays resident;
    # never re-materialized inside the unrolled loop).
    # TODO(synk): for H<=256 hold W_hh in MXU staging registers via
    # pltpu.matmul_push_rhs / matmul_acc_lhs / matmul_pop once per-step pop/clear
    # semantics are verified; removes the per-step weight push from the critical path.
    w_hh_t = w_hh_t_ref[...]                                              # (H, 4H) bf16

    # --- Serial recurrence: only h @ W_hh^T + gate math stays in the loop -------------
    def step(t, carry):
        h, c = carry                                   # h: (1,H) bf16, c: (1,H) f32
        gates = (gx_ref[pl.ds(t, 1), :]
                 + jnp.dot(h, w_hh_t, preferred_element_type=jnp.float32))  # (1,4H) f32
        # Two full-width EUP pushes (4H lanes) instead of four quarter-vreg activations,
        # then slice the needed quarters (i, f, o from sigmoid; g from tanh).
        sig_all = jax.nn.sigmoid(gates)
        tanh_all = jnp.tanh(gates)
        i_g = sig_all[:, 0 * H:1 * H]
        f_g = sig_all[:, 1 * H:2 * H]
        g_g = tanh_all[:, 2 * H:3 * H]
        o_g = sig_all[:, 3 * H:4 * H]
        c = f_g * c + i_g * g_g                                           # f32
        h = (o_g * jnp.tanh(c)).astype(jnp.bfloat16)                      # bf16 for MXU
        h_all_ref[pl.ds(t, 1), :] = h.astype(jnp.float32)   # off the critical dep path
        return h, c

    h0 = jnp.zeros((1, H), jnp.bfloat16)
    c0 = jnp.zeros((1, H), jnp.float32)
    # Bounded unroll: keeps LLO cross-iteration overlap without blowing up the
    # instruction stream at realistic seq_len.
    lax.fori_loop(0, seq_len, step, (h0, c0), unroll=unroll)

    # --- Deferred output projection + stable log-sigmoid + doc-wise sum ---------------
    logits = (jnp.dot(h_all_ref[...].astype(jnp.bfloat16), w_out_t_ref[...],
                      preferred_element_type=jnp.float32)
              + b_out_ref[...])                                           # (T, L) f32
    acc = jnp.sum(jax.nn.log_sigmoid(logits), axis=0, keepdims=True)      # (1, L)
    # Reference adds log(1/num_labels) here; softmax is shift-invariant so it is dropped.
    out_ref[...] = jax.nn.softmax(acc, axis=1)
    # TODO(synk): for large T on v7x (64 MiB VMEM), tile the hoisted projection over T
    # (pltpu.emit_pipeline filling gx chunk-by-chunk) and/or move gx/h_all to bf16.


def _pick_vmem_limit_bytes(seq_len, embedding_dim, hidden_dim, num_labels):
    """Shape-derived VMEM limit, clamped to the chip's physical capacity."""
    bf16, f32 = 2, 4
    x_bytes = seq_len * embedding_dim * bf16
    w_bytes = (embedding_dim * 4 * hidden_dim * bf16
               + hidden_dim * 4 * hidden_dim * bf16
               + 4 * hidden_dim * f32
               + hidden_dim * num_labels * bf16
               + num_labels * f32)
    scratch_bytes = seq_len * 4 * hidden_dim * f32 + seq_len * hidden_dim * f32
    out_bytes = num_labels * f32
    # inputs/outputs may be double-buffered; add headroom for (8,128) tile padding and
    # compiler-internal scratch.
    need = 2 * (x_bytes + w_bytes + out_bytes) + scratch_bytes + (4 << 20)
    try:
        phys = pltpu.get_tpu_info().vmem_capacity_bytes   # 128 MiB v5e/v6e, 64 MiB v7x
    except Exception:
        phys = 64 * 1024 * 1024
    return int(min(max(need, 32 * 1024 * 1024), int(phys * 0.8)))


def lstm_modell_forward(input_sequence, params, *, hidden_dim, num_labels, unroll=8):
    """input_sequence: (1, seq_len) int32 word ids. Returns (1, num_labels) float32."""
    assert input_sequence.shape[0] == 1, "module only supports batch=1 (hidden init size 1)"
    seq_len = int(input_sequence.shape[1])
    idx = input_sequence[0].astype(jnp.int32)          # (T,)

    emb, w_ih, w_hh, b_ih, b_hh, w_out, b_out = params
    embedding_dim = emb.shape[1]

    # Gather only the T needed embedding rows in XLA; the vocab table never enters VMEM.
    # TODO(synk): fuse the gather via PrefetchScalarGridSpec + pl.Element row-gather once
    # a multi-document grid amortizes the ~0.35us per-grid-step overhead.
    x_emb = jnp.take(emb, idx, axis=0).astype(jnp.bfloat16)     # (T, E) bf16

    # Pre-transpose + cast MXU operands to bf16 once in XLA (layout/dtype plumbing;
    # avoids in-kernel XLU transposes and halves weight DMA bytes).
    w_ih_t = jnp.transpose(w_ih).astype(jnp.bfloat16)           # (E, 4H)
    w_hh_t = jnp.transpose(w_hh).astype(jnp.bfloat16)           # (H, 4H)
    w_out_t = jnp.transpose(w_out).astype(jnp.bfloat16)         # (H, L)
    bias = (b_ih + b_hh).reshape(1, -1).astype(jnp.float32)     # (1, 4H) f32
    b_out2 = b_out.reshape(1, -1).astype(jnp.float32)           # (1, L)  f32

    vmem = pl.BlockSpec(memory_space=pltpu.MemorySpace.VMEM)

    kernel = functools.partial(lstm_doc_kernel,
                               hidden_dim=hidden_dim,
                               seq_len=seq_len,
                               unroll=max(1, min(unroll, seq_len)))

    return pl.pallas_call(
        kernel,
        out_shape=jax.ShapeDtypeStruct((1, num_labels), jnp.float32),
        in_specs=[vmem, vmem, vmem, vmem, vmem, vmem],
        out_specs=vmem,
        scratch_shapes=[
            pltpu.VMEM((seq_len, 4 * hidden_dim), jnp.float32),  # gates_x
            pltpu.VMEM((seq_len, hidden_dim), jnp.float32),      # h_t history
        ],
        compiler_params=pltpu.CompilerParams(
            vmem_limit_bytes=_pick_vmem_limit_bytes(seq_len, embedding_dim,
                                                    hidden_dim, num_labels),
        ),
    )(x_emb, w_ih_t, w_hh_t, bias, w_out_t, b_out2)
    # TODO(synk): for multi-document workloads add a leading "parallel" grid axis over
    # documents (dimension_semantics=("parallel", ...)) so v7x's second TensorCore is
    # used, and batch docs into the LHS of the recurrent matmul ((B,H)@(H,4H)).


def init_params(key, num_words, embedding_dim, hidden_dim, num_labels):
    ks = jax.random.split(key, 7)
    s = 1.0 / jnp.sqrt(hidden_dim)
    emb = jax.random.normal(ks[0], (num_words, embedding_dim), jnp.float32)
    w_ih = jax.random.uniform(ks[1], (4 * hidden_dim, embedding_dim), jnp.float32, -s, s)
    w_hh = jax.random.uniform(ks[2], (4 * hidden_dim, hidden_dim), jnp.float32, -s, s)
    b_ih = jax.random.uniform(ks[3], (4 * hidden_dim,), jnp.float32, -s, s)
    b_hh = jax.random.uniform(ks[4], (4 * hidden_dim,), jnp.float32, -s, s)
    w_out = jax.random.uniform(ks[5], (num_labels, hidden_dim), jnp.float32, -s, s)
    b_out = jax.random.uniform(ks[6], (num_labels,), jnp.float32, -s, s)
    return emb, w_ih, w_hh, b_ih, b_hh, w_out, b_out


def reference_forward(input_sequence, params, *, hidden_dim, num_labels):
    """Plain-JAX f32 replica of the PyTorch forward, for checking."""
    emb, w_ih, w_hh, b_ih, b_hh, w_out, b_out = params
    H, L = hidden_dim, num_labels
    idx = input_sequence[0]
    x = emb[idx]                                         # (T, E)
    h = jnp.zeros((1, H), jnp.float32)
    c = jnp.zeros((1, H), jnp.float32)
    acc = jnp.zeros((1, L), jnp.float32)
    for t in range(x.shape[0]):
        gates = x[t:t + 1] @ w_ih.T + h @ w_hh.T + b_ih + b_hh
        i_g = jax.nn.sigmoid(gates[:, 0 * H:1 * H])
        f_g = jax.nn.sigmoid(gates[:, 1 * H:2 * H])
        g_g = jnp.tanh(gates[:, 2 * H:3 * H])
        o_g = jax.nn.sigmoid(gates[:, 3 * H:4 * H])
        c = f_g * c + i_g * g_g
        h = o_g * jnp.tanh(c)
        logits = h @ w_out.T + b_out
        acc = acc + jnp.log(jax.nn.sigmoid(logits))
    acc = acc + jnp.log(1.0 / L)                          # softmax-invariant shift
    return jax.nn.softmax(acc, axis=1)


if __name__ == "__main__":
    # Small, forward-consistent shapes.
    num_words = 100
    embedding_dim = 32
    hidden_dim = 32
    num_labels = 8
    seq_len = 8
    batch = 1  # module's self.hidden is init_hidden(1) -> batch must be 1

    key = jax.random.PRNGKey(0)
    k_param, k_input = jax.random.split(key)
    params = init_params(k_param, num_words, embedding_dim, hidden_dim, num_labels)
    input_sequence = jax.random.randint(k_input, (batch, seq_len), 0, num_words, jnp.int32)

    out = lstm_modell_forward(input_sequence, params,
                              hidden_dim=hidden_dim, num_labels=num_labels)
    out = jax.block_until_ready(out)

    ref = reference_forward(input_sequence, params,
                            hidden_dim=hidden_dim, num_labels=num_labels)
    assert out.shape == (batch, num_labels)
    # Looser tolerance than the pure-f32 version: MXU operands are bf16 (f32 accumulate),
    # so small error accumulates through the serial recurrence.
    assert jnp.allclose(out, ref, rtol=3e-2, atol=3e-2), (out, ref)
    assert jnp.allclose(jnp.sum(out, axis=1), 1.0, atol=1e-5)

    print("KERNEL_OK")
</pallas_src>

<mosaic_0001>
module attributes {stable_mosaic.version = 11 : i64} {
  func.func @lstm_doc_kernel(%arg0: memref<8x32xbf16, #tpu.memory_space<vmem>>, %arg1: memref<32x128xbf16, #tpu.memory_space<vmem>>, %arg2: memref<32x128xbf16, #tpu.memory_space<vmem>>, %arg3: memref<1x128xf32, #tpu.memory_space<vmem>>, %arg4: memref<32x8xbf16, #tpu.memory_space<vmem>>, %arg5: memref<1x8xf32, #tpu.memory_space<vmem>>, %arg6: memref<1x8xf32, #tpu.memory_space<vmem>>, %arg7: memref<8x128xf32, #tpu.memory_space<vmem>>, %arg8: memref<8x32xf32, #tpu.memory_space<vmem>>) attributes {dimension_semantics = [], scalar_prefetch = 0 : i64, scratch_operands = 2 : i64, tpu.core_type = #tpu.core_type<tc>} {
    %c0 = arith.constant 0 : index
    %c0_0 = arith.constant 0 : index
    %0 = vector.load %arg0[%c0, %c0_0] : memref<8x32xbf16, #tpu.memory_space<vmem>>, vector<8x32xbf16>
    %c0_1 = arith.constant 0 : index
    %c0_2 = arith.constant 0 : index
    %1 = vector.load %arg1[%c0_1, %c0_2] : memref<32x128xbf16, #tpu.memory_space<vmem>>, vector<32x128xbf16>
    %cst = arith.constant dense<0.000000e+00> : vector<8x128xf32>
    %2 = tpu.matmul %0, %1, %cst {dimension_numbers = #tpu.dot_dimension_numbers<[1], [0], [0], [1], [0, 0, 1, 1], [], []>} : vector<8x32xbf16>, vector<32x128xbf16>, vector<8x128xf32> -> vector<8x128xf32>
    %c0_3 = arith.constant 0 : index
    %c0_4 = arith.constant 0 : index
    %3 = vector.load %arg3[%c0_3, %c0_4] : memref<1x128xf32, #tpu.memory_space<vmem>>, vector<1x128xf32>
    %4 = vector.broadcast %3 : vector<1x128xf32> to vector<8x128xf32>
    %5 = arith.addf %2, %4 : vector<8x128xf32>
    %c0_5 = arith.constant 0 : index
    %c0_6 = arith.constant 0 : index
    %6 = vector.load %arg7[%c0_5, %c0_6] : memref<8x128xf32, #tpu.memory_space<vmem>>, vector<8x128xf32>
    tpu.vector_store %arg7[%c0_5, %c0_6], %5 {strides = array<i32>} : memref<8x128xf32, #tpu.memory_space<vmem>>, vector<8x128xf32>,
    %c0_7 = arith.constant 0 : index
    %c0_8 = arith.constant 0 : index
    %7 = vector.load %arg2[%c0_7, %c0_8] : memref<32x128xbf16, #tpu.memory_space<vmem>>, vector<32x128xbf16>
    %cst_9 = arith.constant 0.000000e+00 : bf16
    %8 = vector.broadcast %cst_9 : bf16 to vector<1x32xbf16>
    %cst_10 = arith.constant 0.000000e+00 : f32
    %9 = vector.broadcast %cst_10 : f32 to vector<1x32xf32>
    %c0_i32 = arith.constant 0 : i32
    %10 = arith.index_cast %c0_i32 : i32 to index
    %c0_11 = arith.constant 0 : index
    %11 = vector.load %arg7[%10, %c0_11] : memref<8x128xf32, #tpu.memory_space<vmem>>, vector<1x128xf32>
    %cst_12 = arith.constant dense<0.000000e+00> : vector<1x128xf32>
    %12 = tpu.matmul %8, %7, %cst_12 {dimension_numbers = #tpu.dot_dimension_numbers<[1], [0], [0], [1], [0, 0, 1, 1], [], []>} : vector<1x32xbf16>, vector<32x128xbf16>, vector<1x128xf32> -> vector<1x128xf32>
    %13 = arith.addf %11, %12 : vector<1x128xf32>
    %14 = arith.negf %13 : vector<1x128xf32>
    %15 = math.exp %14 : vector<1x128xf32>
    %cst_13 = arith.constant 1.000000e+00 : f32
    %16 = vector.broadcast %cst_13 : f32 to vector<1x128xf32>
    %17 = arith.addf %16, %15 : vector<1x128xf32>
    %18 = arith.divf %16, %17 : vector<1x128xf32>
    %19 = math.tanh %13 : vector<1x128xf32>
    %20 = vector.extract_strided_slice %18 {offsets = [0, 0], sizes = [1, 32], strides = [1, 1]} : vector<1x128xf32> to vector<1x32xf32>
    %21 = vector.extract_strided_slice %18 {offsets = [0, 32], sizes = [1, 32], strides = [1, 1]} : vector<1x128xf32> to vector<1x32xf32>
    %22 = vector.extract_strided_slice %19 {offsets = [0, 64], sizes = [1, 32], strides = [1, 1]} : vector<1x128xf32> to vector<1x32xf32>
    %23 = vector.extract_strided_slice %18 {offsets = [0, 96], sizes = [1, 32], strides = [1, 1]} : vector<1x128xf32> to vector<1x32xf32>
    %24 = arith.mulf %21, %9 : vector<1x32xf32>
    %25 = arith.mulf %20, %22 : vector<1x32xf32>
    %26 = arith.addf %24, %25 : vector<1x32xf32>
    %27 = math.tanh %26 : vector<1x32xf32>
    %28 = arith.mulf %23, %27 : vector<1x32xf32>
    %29 = arith.truncf %28 : vector<1x32xf32> to vector<1x32xbf16>
    %30 = arith.extf %29 : vector<1x32xbf16> to vector<1x32xf32>
    %31 = arith.index_cast %c0_i32 : i32 to index
    %c0_14 = arith.constant 0 : index
    %32 = vector.load %arg8[%31, %c0_14] : memref<8x32xf32, #tpu.memory_space<vmem>>, vector<1x32xf32>
    tpu.vector_store %arg8[%31, %c0_14], %30 {strides = array<i32>} : memref<8x32xf32, #tpu.memory_space<vmem>>, vector<1x32xf32>,
    %c1_i32 = arith.constant 1 : i32
    %33 = arith.index_cast %c1_i32 : i32 to index
    %c0_15 = arith.constant 0 : index
    %34 = vector.load %arg7[%33, %c0_15] : memref<8x128xf32, #tpu.memory_space<vmem>>, vector<1x128xf32>
    %cst_16 = arith.constant dense<0.000000e+00> : vector<1x128xf32>
    %35 = tpu.matmul %29, %7, %cst_16 {dimension_numbers = #tpu.dot_dimension_numbers<[1], [0], [0], [1], [0, 0, 1, 1], [], []>} : vector<1x32xbf16>, vector<32x128xbf16>, vector<1x128xf32> -> vector<1x128xf32>
    %36 = arith.addf %34, %35 : vector<1x128xf32>
    %37 = arith.negf %36 : vector<1x128xf32>
    %38 = math.exp %37 : vector<1x128xf32>
    %cst_17 = arith.constant 1.000000e+00 : f32
    %39 = vector.broadcast %cst_17 : f32 to vector<1x128xf32>
    %40 = arith.addf %39, %38 : vector<1x128xf32>
    %41 = arith.divf %39, %40 : vector<1x128xf32>
    %42 = math.tanh %36 : vector<1x128xf32>
    %43 = vector.extract_strided_slice %41 {offsets = [0, 0], sizes = [1, 32], strides = [1, 1]} : vector<1x128xf32> to vector<1x32xf32>
    %44 = vector.extract_strided_slice %41 {offsets = [0, 32], sizes = [1, 32], strides = [1, 1]} : vector<1x128xf32> to vector<1x32xf32>
    %45 = vector.extract_strided_slice %42 {offsets = [0, 64], sizes = [1, 32], strides = [1, 1]} : vector<1x128xf32> to vector<1x32xf32>
    %46 = vector.extract_strided_slice %41 {offsets = [0, 96], sizes = [1, 32], strides = [1, 1]} : vector<1x128xf32> to vector<1x32xf32>
    %47 = arith.mulf %44, %26 : vector<1x32xf32>
    %48 = arith.mulf %43, %45 : vector<1x32xf32>
    %49 = arith.addf %47, %48 : vector<1x32xf32>
    %50 = math.tanh %49 : vector<1x32xf32>
    %51 = arith.mulf %46, %50 : vector<1x32xf32>
    %52 = arith.truncf %51 : vector<1x32xf32> to vector<1x32xbf16>
    %53 = arith.extf %52 : vector<1x32xbf16> to vector<1x32xf32>
    %54 = arith.index_cast %c1_i32 : i32 to index
    %c0_18 = arith.constant 0 : index
    %55 = vector.load %arg8[%54, %c0_18] : memref<8x32xf32, #tpu.memory_space<vmem>>, vector<1x32xf32>
    tpu.vector_store %arg8[%54, %c0_18], %53 {strides = array<i32>} : memref<8x32xf32, #tpu.memory_space<vmem>>, vector<1x32xf32>,
    %c2_i32 = arith.constant 2 : i32
    %56 = arith.index_cast %c2_i32 : i32 to index
    %c0_19 = arith.constant 0 : index
    %57 = vector.load %arg7[%56, %c0_19] : memref<8x128xf32, #tpu.memory_space<vmem>>, vector<1x128xf32>
    %cst_20 = arith.constant dense<0.000000e+00> : vector<1x128xf32>
    %58 = tpu.matmul %52, %7, %cst_20 {dimension_numbers = #tpu.dot_dimension_numbers<[1], [0], [0], [1], [0, 0, 1, 1], [], []>} : vector<1x32xbf16>, vector<32x128xbf16>, vector<1x128xf32> -> vector<1x128xf32>
    %59 = arith.addf %57, %58 : vector<1x128xf32>
    %60 = arith.negf %59 : vector<1x128xf32>
    %61 = math.exp %60 : vector<1x128xf32>
    %cst_21 = arith.constant 1.000000e+00 : f32
    %62 = vector.broadcast %cst_21 : f32 to vector<1x128xf32>
    %63 = arith.addf %62, %61 : vector<1x128xf32>
    %64 = arith.divf %62, %63 : vector<1x128xf32>
    %65 = math.tanh %59 : vector<1x128xf32>
    %66 = vector.extract_strided_slice %64 {offsets = [0, 0], sizes = [1, 32], strides = [1, 1]} : vector<1x128xf32> to vector<1x32xf32>
    %67 = vector.extract_strided_slice %64 {offsets = [0, 32], sizes = [1, 32], strides = [1, 1]} : vector<1x128xf32> to vector<1x32xf32>
    %68 = vector.extract_strided_slice %65 {offsets = [0, 64], sizes = [1, 32], strides = [1, 1]} : vector<1x128xf32> to vector<1x32xf32>
    %69 = vector.extract_strided_slice %64 {offsets = [0, 96], sizes = [1, 32], strides = [1, 1]} : vector<1x128xf32> to vector<1x32xf32>
    %70 = arith.mulf %67, %49 : vector<1x32xf32>
    %71 = arith.mulf %66, %68 : vector<1x32xf32>
    %72 = arith.addf %70, %71 : vector<1x32xf32>
    %73 = math.tanh %72 : vector<1x32xf32>
    %74 = arith.mulf %69, %73 : vector<1x32xf32>
    %75 = arith.truncf %74 : vector<1x32xf32> to vector<1x32xbf16>
    %76 = arith.extf %75 : vector<1x32xbf16> to vector<1x32xf32>
    %77 = arith.index_cast %c2_i32 : i32 to index
    %c0_22 = arith.constant 0 : index
    %78 = vector.load %arg8[%77, %c0_22] : memref<8x32xf32, #tpu.memory_space<vmem>>, vector<1x32xf32>
    tpu.vector_store %arg8[%77, %c0_22], %76 {strides = array<i32>} : memref<8x32xf32, #tpu.memory_space<vmem>>, vector<1x32xf32>,
    %c3_i32 = arith.constant 3 : i32
    %79 = arith.index_cast %c3_i32 : i32 to index
    %c0_23 = arith.constant 0 : index
    %80 = vector.load %arg7[%79, %c0_23] : memref<8x128xf32, #tpu.memory_space<vmem>>, vector<1x128xf32>
    %cst_24 = arith.constant dense<0.000000e+00> : vector<1x128xf32>
    %81 = tpu.matmul %75, %7, %cst_24 {dimension_numbers = #tpu.dot_dimension_numbers<[1], [0], [0], [1], [0, 0, 1, 1], [], []>} : vector<1x32xbf16>, vector<32x128xbf16>, vector<1x128xf32> -> vector<1x128xf32>
    %82 = arith.addf %80, %81 : vector<1x128xf32>
    %83 = arith.negf %82 : vector<1x128xf32>
    %84 = math.exp %83 : vector<1x128xf32>
    %cst_25 = arith.constant 1.000000e+00 : f32
    %85 = vector.broadcast %cst_25 : f32 to vector<1x128xf32>
    %86 = arith.addf %85, %84 : vector<1x128xf32>
    %87 = arith.divf %85, %86 : vector<1x128xf32>
    %88 = math.tanh %82 : vector<1x128xf32>
    %89 = vector.extract_strided_slice %87 {offsets = [0, 0], sizes = [1, 32], strides = [1, 1]} : vector<1x128xf32> to vector<1x32xf32>
    %90 = vector.extract_strided_slice %87 {offsets = [0, 32], sizes = [1, 32], strides = [1, 1]} : vector<1x128xf32> to vector<1x32xf32>
    %91 = vector.extract_strided_slice %88 {offsets = [0, 64], sizes = [1, 32], strides = [1, 1]} : vector<1x128xf32> to vector<1x32xf32>
    %92 = vector.extract_strided_slice %87 {offsets = [0, 96], sizes = [1, 32], strides = [1, 1]} : vector<1x128xf32> to vector<1x32xf32>
    %93 = arith.mulf %90, %72 : vector<1x32xf32>
    %94 = arith.mulf %89, %91 : vector<1x32xf32>
    %95 = arith.addf %93, %94 : vector<1x32xf32>
    %96 = math.tanh %95 : vector<1x32xf32>
    %97 = arith.mulf %92, %96 : vector<1x32xf32>
    %98 = arith.truncf %97 : vector<1x32xf32> to vector<1x32xbf16>
    %99 = arith.extf %98 : vector<1x32xbf16> to vector<1x32xf32>
    %100 = arith.index_cast %c3_i32 : i32 to index
    %c0_26 = arith.constant 0 : index
    %101 = vector.load %arg8[%100, %c0_26] : memref<8x32xf32, #tpu.memory_space<vmem>>, vector<1x32xf32>
    tpu.vector_store %arg8[%100, %c0_26], %99 {strides = array<i32>} : memref<8x32xf32, #tpu.memory_space<vmem>>, vector<1x32xf32>,
    %c4_i32 = arith.constant 4 : i32
    %102 = arith.index_cast %c4_i32 : i32 to index
    %c0_27 = arith.constant 0 : index
    %103 = vector.load %arg7[%102, %c0_27] : memref<8x128xf32, #tpu.memory_space<vmem>>, vector<1x128xf32>
    %cst_28 = arith.constant dense<0.000000e+00> : vector<1x128xf32>
    %104 = tpu.matmul %98, %7, %cst_28 {dimension_numbers = #tpu.dot_dimension_numbers<[1], [0], [0], [1], [0, 0, 1, 1], [], []>} : vector<1x32xbf16>, vector<32x128xbf16>, vector<1x128xf32> -> vector<1x128xf32>
    %105 = arith.addf %103, %104 : vector<1x128xf32>
    %106 = arith.negf %105 : vector<1x128xf32>
    %107 = math.exp %106 : vector<1x128xf32>
    %cst_29 = arith.constant 1.000000e+00 : f32
    %108 = vector.broadcast %cst_29 : f32 to vector<1x128xf32>
    %109 = arith.addf %108, %107 : vector<1x128xf32>
    %110 = arith.divf %108, %109 : vector<1x128xf32>
    %111 = math.tanh %105 : vector<1x128xf32>
    %112 = vector.extract_strided_slice %110 {offsets = [0, 0], sizes = [1, 32], strides = [1, 1]} : vector<1x128xf32> to vector<1x32xf32>
    %113 = vector.extract_strided_slice %110 {offsets = [0, 32], sizes = [1, 32], strides = [1, 1]} : vector<1x128xf32> to vector<1x32xf32>
    %114 = vector.extract_strided_slice %111 {offsets = [0, 64], sizes = [1, 32], strides = [1, 1]} : vector<1x128xf32> to vector<1x32xf32>
    %115 = vector.extract_strided_slice %110 {offsets = [0, 96], sizes = [1, 32], strides = [1, 1]} : vector<1x128xf32> to vector<1x32xf32>
    %116 = arith.mulf %113, %95 : vector<1x32xf32>
    %117 = arith.mulf %112, %114 : vector<1x32xf32>
    %118 = arith.addf %116, %117 : vector<1x32xf32>
    %119 = math.tanh %118 : vector<1x32xf32>
    %120 = arith.mulf %115, %119 : vector<1x32xf32>
    %121 = arith.truncf %120 : vector<1x32xf32> to vector<1x32xbf16>
    %122 = arith.extf %121 : vector<1x32xbf16> to vector<1x32xf32>
    %123 = arith.index_cast %c4_i32 : i32 to index
    %c0_30 = arith.constant 0 : index
    %124 = vector.load %arg8[%123, %c0_30] : memref<8x32xf32, #tpu.memory_space<vmem>>, vector<1x32xf32>
    tpu.vector_store %arg8[%123, %c0_30], %122 {strides = array<i32>} : memref<8x32xf32, #tpu.memory_space<vmem>>, vector<1x32xf32>,
    %c5_i32 = arith.constant 5 : i32
    %125 = arith.index_cast %c5_i32 : i32 to index
    %c0_31 = arith.constant 0 : index
    %126 = vector.load %arg7[%125, %c0_31] : memref<8x128xf32, #tpu.memory_space<vmem>>, vector<1x128xf32>
    %cst_32 = arith.constant dense<0.000000e+00> : vector<1x128xf32>
    %127 = tpu.matmul %121, %7, %cst_32 {dimension_numbers = #tpu.dot_dimension_numbers<[1], [0], [0], [1], [0, 0, 1, 1], [], []>} : vector<1x32xbf16>, vector<32x128xbf16>, vector<1x128xf32> -> vector<1x128xf32>
    %128 = arith.addf %126, %127 : vector<1x128xf32>
    %129 = arith.negf %128 : vector<1x128xf32>
    %130 = math.exp %129 : vector<1x128xf32>
    %cst_33 = arith.constant 1.000000e+00 : f32
    %131 = vector.broadcast %cst_33 : f32 to vector<1x128xf32>
    %132 = arith.addf %131, %130 : vector<1x128xf32>
    %133 = arith.divf %131, %132 : vector<1x128xf32>
    %134 = math.tanh %128 : vector<1x128xf32>
    %135 = vector.extract_strided_slice %133 {offsets = [0, 0], sizes = [1, 32], strides = [1, 1]} : vector<1x128xf32> to vector<1x32xf32>
    %136 = vector.extract_strided_slice %133 {offsets = [0, 32], sizes = [1, 32], strides = [1, 1]} : vector<1x128xf32> to vector<1x32xf32>
    %137 = vector.extract_strided_slice %134 {offsets = [0, 64], sizes = [1, 32], strides = [1, 1]} : vector<1x128xf32> to vector<1x32xf32>
    %138 = vector.extract_strided_slice %133 {offsets = [0, 96], sizes = [1, 32], strides = [1, 1]} : vector<1x128xf32> to vector<1x32xf32>
    %139 = arith.mulf %136, %118 : vector<1x32xf32>
    %140 = arith.mulf %135, %137 : vector<1x32xf32>
    %141 = arith.addf %139, %140 : vector<1x32xf32>
    %142 = math.tanh %141 : vector<1x32xf32>
    %143 = arith.mulf %138, %142 : vector<1x32xf32>
    %144 = arith.truncf %143 : vector<1x32xf32> to vector<1x32xbf16>
    %145 = arith.extf %144 : vector<1x32xbf16> to vector<1x32xf32>
    %146 = arith.index_cast %c5_i32 : i32 to index
    %c0_34 = arith.constant 0 : index
    %147 = vector.load %arg8[%146, %c0_34] : memref<8x32xf32, #tpu.memory_space<vmem>>, vector<1x32xf32>
    tpu.vector_store %arg8[%146, %c0_34], %145 {strides = array<i32>} : memref<8x32xf32, #tpu.memory_space<vmem>>, vector<1x32xf32>,
    %c6_i32 = arith.constant 6 : i32
    %148 = arith.index_cast %c6_i32 : i32 to index
    %c0_35 = arith.constant 0 : index
    %149 = vector.load %arg7[%148, %c0_35] : memref<8x128xf32, #tpu.memory_space<vmem>>, vector<1x128xf32>
    %cst_36 = arith.constant dense<0.000000e+00> : vector<1x128xf32>
    %150 = tpu.matmul %144, %7, %cst_36 {dimension_numbers = #tpu.dot_dimension_numbers<[1], [0], [0], [1], [0, 0, 1, 1], [], []>} : vector<1x32xbf16>, vector<32x128xbf16>, vector<1x128xf32> -> vector<1x128xf32>
    %151 = arith.addf %149, %150 : vector<1x128xf32>
    %152 = arith.negf %151 : vector<1x128xf32>
    %153 = math.exp %152 : vector<1x128xf32>
    %cst_37 = arith.constant 1.000000e+00 : f32
    %154 = vector.broadcast %cst_37 : f32 to vector<1x128xf32>
    %155 = arith.addf %154, %153 : vector<1x128xf32>
    %156 = arith.divf %154, %155 : vector<1x128xf32>
    %157 = math.tanh %151 : vector<1x128xf32>
    %158 = vector.extract_strided_slice %156 {offsets = [0, 0], sizes = [1, 32], strides = [1, 1]} : vector<1x128xf32> to vector<1x32xf32>
    %159 = vector.extract_strided_slice %156 {offsets = [0, 32], sizes = [1, 32], strides = [1, 1]} : vector<1x128xf32> to vector<1x32xf32>
    %160 = vector.extract_strided_slice %157 {offsets = [0, 64], sizes = [1, 32], strides = [1, 1]} : vector<1x128xf32> to vector<1x32xf32>
    %161 = vector.extract_strided_slice %156 {offsets = [0, 96], sizes = [1, 32], strides = [1, 1]} : vector<1x128xf32> to vector<1x32xf32>
    %162 = arith.mulf %159, %141 : vector<1x32xf32>
    %163 = arith.mulf %158, %160 : vector<1x32xf32>
    %164 = arith.addf %162, %163 : vector<1x32xf32>
    %165 = math.tanh %164 : vector<1x32xf32>
    %166 = arith.mulf %161, %165 : vector<1x32xf32>
    %167 = arith.truncf %166 : vector<1x32xf32> to vector<1x32xbf16>
    %168 = arith.extf %167 : vector<1x32xbf16> to vector<1x32xf32>
    %169 = arith.index_cast %c6_i32 : i32 to index
    %c0_38 = arith.constant 0 : index
    %170 = vector.load %arg8[%169, %c0_38] : memref<8x32xf32, #tpu.memory_space<vmem>>, vector<1x32xf32>
    tpu.vector_store %arg8[%169, %c0_38], %168 {strides = array<i32>} : memref<8x32xf32, #tpu.memory_space<vmem>>, vector<1x32xf32>,
    %c7_i32 = arith.constant 7 : i32
    %171 = arith.index_cast %c7_i32 : i32 to index
    %c0_39 = arith.constant 0 : index
    %172 = vector.load %arg7[%171, %c0_39] : memref<8x128xf32, #tpu.memory_space<vmem>>, vector<1x128xf32>
    %cst_40 = arith.constant dense<0.000000e+00> : vector<1x128xf32>
    %173 = tpu.matmul %167, %7, %cst_40 {dimension_numbers = #tpu.dot_dimension_numbers<[1], [0], [0], [1], [0, 0, 1, 1], [], []>} : vector<1x32xbf16>, vector<32x128xbf16>, vector<1x128xf32> -> vector<1x128xf32>
    %174 = arith.addf %172, %173 : vector<1x128xf32>
    %175 = arith.negf %174 : vector<1x128xf32>
    %176 = math.exp %175 : vector<1x128xf32>
    %cst_41 = arith.constant 1.000000e+00 : f32
    %177 = vector.broadcast %cst_41 : f32 to vector<1x128xf32>
    %178 = arith.addf %177, %176 : vector<1x128xf32>
    %179 = arith.divf %177, %178 : vector<1x128xf32>
    %180 = math.tanh %174 : vector<1x128xf32>
    %181 = vector.extract_strided_slice %179 {offsets = [0, 0], sizes = [1, 32], strides = [1, 1]} : vector<1x128xf32> to vector<1x32xf32>
    %182 = vector.extract_strided_slice %179 {offsets = [0, 32], sizes = [1, 32], strides = [1, 1]} : vector<1x128xf32> to vector<1x32xf32>
    %183 = vector.extract_strided_slice %180 {offsets = [0, 64], sizes = [1, 32], strides = [1, 1]} : vector<1x128xf32> to vector<1x32xf32>
    %184 = vector.extract_strided_slice %179 {offsets = [0, 96], sizes = [1, 32], strides = [1, 1]} : vector<1x128xf32> to vector<1x32xf32>
    %185 = arith.mulf %182, %164 : vector<1x32xf32>
    %186 = arith.mulf %181, %183 : vector<1x32xf32>
    %187 = arith.addf %185, %186 : vector<1x32xf32>
    %188 = math.tanh %187 : vector<1x32xf32>
    %189 = arith.mulf %184, %188 : vector<1x32xf32>
    %190 = arith.truncf %189 : vector<1x32xf32> to vector<1x32xbf16>
    %191 = arith.extf %190 : vector<1x32xbf16> to vector<1x32xf32>
    %192 = arith.index_cast %c7_i32 : i32 to index
    %c0_42 = arith.constant 0 : index
    %193 = vector.load %arg8[%192, %c0_42] : memref<8x32xf32, #tpu.memory_space<vmem>>, vector<1x32xf32>
    tpu.vector_store %arg8[%192, %c0_42], %191 {strides = array<i32>} : memref<8x32xf32, #tpu.memory_space<vmem>>, vector<1x32xf32>,
    %c8_i32 = arith.constant 8 : i32
    %c0_43 = arith.constant 0 : index
    %c0_44 = arith.constant 0 : index
    %194 = vector.load %arg8[%c0_43, %c0_44] : memref<8x32xf32, #tpu.memory_space<vmem>>, vector<8x32xf32>
    %195 = arith.truncf %194 : vector<8x32xf32> to vector<8x32xbf16>
    %c0_45 = arith.constant 0 : index
    %c0_46 = arith.constant 0 : index
    %196 = vector.load %arg4[%c0_45, %c0_46] : memref<32x8xbf16, #tpu.memory_space<vmem>>, vector<32x8xbf16>
    %cst_47 = arith.constant dense<0.000000e+00> : vector<8x8xf32>
    %197 = tpu.matmul %195, %196, %cst_47 {dimension_numbers = #tpu.dot_dimension_numbers<[1], [0], [0], [1], [0, 0, 1, 1], [], []>} : vector<8x32xbf16>, vector<32x8xbf16>, vector<8x8xf32> -> vector<8x8xf32>
    %c0_48 = arith.constant 0 : index
    %c0_49 = arith.constant 0 : index
    %198 = vector.load %arg5[%c0_48, %c0_49] : memref<1x8xf32, #tpu.memory_space<vmem>>, vector<1x8xf32>
    %199 = vector.broadcast %198 : vector<1x8xf32> to vector<8x8xf32>
    %200 = arith.addf %197, %199 : vector<8x8xf32>
    %cst_50 = arith.constant 0.000000e+00 : f32
    %201 = vector.broadcast %cst_50 : f32 to vector<8x8xf32>
    %202 = arith.subf %201, %200 : vector<8x8xf32>
    %cst_51 = arith.constant 0.000000e+00 : f32
    %203 = vector.broadcast %cst_51 : f32 to vector<8x8xf32>
    %204 = arith.maximumf %202, %203 : vector<8x8xf32>
    %205 = vector.broadcast %cst_51 : f32 to vector<8x8xf32>
    %206 = arith.subf %202, %205 : vector<8x8xf32>
    %207 = arith.cmpf one, %206, %206 : vector<8x8xf32>
    %208 = vector.broadcast %cst_51 : f32 to vector<8x8xf32>
    %209 = arith.addf %202, %208 : vector<8x8xf32>
    %210 = math.absf %206 : vector<8x8xf32>
    %cst_52 = arith.constant 0.000000e+00 : f32
    %211 = vector.broadcast %cst_52 : f32 to vector<8x8xf32>
    %212 = arith.subf %211, %210 : vector<8x8xf32>
    %213 = math.exp %212 : vector<8x8xf32>
    %214 = math.log1p %213 : vector<8x8xf32>
    %215 = arith.addf %204, %214 : vector<8x8xf32>
    %216 = arith.select %207, %209, %215 : vector<8x8xi1>, vector<8x8xf32>
    %cst_53 = arith.constant 0.000000e+00 : f32
    %217 = vector.broadcast %cst_53 : f32 to vector<8x8xf32>
    %218 = arith.subf %217, %216 : vector<8x8xf32>
    %cst_54 = arith.constant dense<0.000000e+00> : vector<8xf32>
    %219 = vector.multi_reduction <add>, %218, %cst_54 [0] : vector<8x8xf32> to vector<8xf32>
    %220 = vector.shape_cast %219 : vector<8xf32> to vector<1x8xf32>
    %cst_55 = arith.constant dense<0xFF800000> : vector<1xf32>
    %221 = vector.multi_reduction <maximumf>, %220, %cst_55 [1] : vector<1x8xf32> to vector<1xf32>
    %cst_56 = arith.constant 0xFF800000 : f32
    %222 = vector.broadcast %cst_56 : f32 to vector<1xf32>
    %223 = arith.maximumf %222, %221 : vector<1xf32>
    %224 = vector.shape_cast %223 : vector<1xf32> to vector<1x1xf32>
    %225 = vector.broadcast %224 : vector<1x1xf32> to vector<1x8xf32>
    %226 = arith.subf %220, %225 : vector<1x8xf32>
    %227 = math.exp %226 : vector<1x8xf32>
    %cst_57 = arith.constant dense<0.000000e+00> : vector<1xf32>
    %228 = vector.multi_reduction <add>, %227, %cst_57 [1] : vector<1x8xf32> to vector<1xf32>
    %229 = vector.shape_cast %228 : vector<1xf32> to vector<1x1xf32>
    %230 = vector.broadcast %229 : vector<1x1xf32> to vector<1x8xf32>
    %231 = arith.divf %227, %230 : vector<1x8xf32>
    %c0_58 = arith.constant 0 : index
    %c0_59 = arith.constant 0 : index
    %232 = vector.load %arg6[%c0_58, %c0_59] : memref<1x8xf32, #tpu.memory_space<vmem>>, vector<1x8xf32>
    tpu.vector_store %arg6[%c0_58, %c0_59], %231 {strides = array<i32>} : memref<1x8xf32, #tpu.memory_space<vmem>>, vector<1x8xf32>,
    return
  }
}

</mosaic_0001>

<bundles_post_ra>
// kernel: tpu_custom_call.1
= control target key start
LH: loop header
LB: loop body
LE: loop exit
PB: predicated region body
PF: predicated region fallthrough
CT: control target
= control target key end

     0   :  { %11 = vsyncpa [#allocation5], 0  ;;  %s1105_s0 = inlined_call_operand.vmem [shape: bf16[8,32], index: 0, kind: input, shape index: {}]   ;;  %s1106_s1 = inlined_call_operand.vmem [shape: bf16[32,128], index: 1, kind: input, shape index: {}]   ;;  %s1107_s2 = inlined_call_operand.hbm [shape: bf16[32,128], index: 2, kind: input, shape index: {}]   ;;  %s1108_s3 = inlined_call_operand.vmem [shape: f32[1,128], index: 3, kind: input, shape index: {}]   ;;  %s1109_s4 = inlined_call_operand.vmem [shape: bf16[32,8], index: 4, kind: input, shape index: {}]   ;;  %s1110_s5 = inlined_call_operand.vmem [shape: f32[1,8], index: 5, kind: input, shape index: {}]   ;;  %s1111_s6 = inlined_call_operand.hbm [shape: f32[1,8], index: 6, kind: output, shape index: {}]  }
   0x1   :  { %12 = vsyncpa [#allocation6], 0  ;;  %s21_s23 = sshll.u32 %s1107_s2, 4  ;;  %s936_s24 = smov [#allocation4]   ;;  %s22_s23 = int_to_ptr.hbm [resolvable:$true] %s21_s23 }
   0x2   :  { %s23_s25 = sshll.u32 %s936_s24, 4  ;;  %s937_s26 = smov 64   ;;  %s24_s25 = int_to_ptr.vmem [resolvable:$true] %s23_s25 }
   0x3   :  { %s938_s27 = smov 4  }
   0x4   :  { %29 = dma.hbm_to_vmem [thread:$0]  %s22_s23, 256, %s24_s25, [#allocation5], %s937_s26, %s937_s26, %s938_s27  }
   0x5   :  { %932 = dma.done.wait [#allocation5], 256  }
   0x6   :  { %933 = vsyncadd [#allocation5], 4294967040  ;;  %v779_v0 = vld [vmem:[%s1106_s1 + $0x8] sm:$0xff]  ;;  %v781_v1 = vld [vmem:[#allocation4 + $0x8] sm:$0xff]  ;;  %vm62_vm0 = vcmask 261120   ;;  %v939_v5 = vmov 0  }
   0x7   :  { %72 = vmatpush.bf16.msra.mxu0 %v779_v0  ;;  %106 = vmatpush.bf16.msra.mxu1 %v781_v1  ;;  %v778_v2 = vld [vmem:[%s1106_s1] sm:$0xff]  ;;  %v780_v3 = vld [vmem:[#allocation4] sm:$0xff]  ;;  %s727_s17 = sshll.u32 %s1111_s6, 4  ;;  %s728_s17 = int_to_ptr.hbm [resolvable:$true] %s727_s17 }
   0x8   :  { %174 = vmatpush.bf16.msra.mxu2 %v781_v1  ;;  %241 = vmatpush.bf16.msra.mxu3 %v781_v1  ;;  %v41_v4 = vld [vmem:[%s1105_s0] sm:$0xf]  ;;  %s940_s0 = smov 32  }
   0x9   :  { %v810_v6 = vld [vmem:[%s1108_s3] ss:$0 sm:$0xff] }
   0xb   :  { %73 = vmatpush.bf16.msra.mxu0 %v778_v2  ;;  %107 = vmatpush.bf16.msra.mxu1 %v780_v3 }
   0xc   :  { %175 = vmatpush.bf16.msra.mxu2 %v780_v3  ;;  %242 = vmatpush.bf16.msra.mxu3 %v780_v3 }
   0xe   :  { %745 = vmatmul.msk.bf16.vlgmr.msra.gmra.mxu0 %vm62_vm0, %v41_v4  ;;  %108 = vmatmul.bf16.vlgmr.msra.gmra.mxu1 %v939_v5 }
   0xf   :  { %308 = vmatpush.bf16.msrb.mxu0 %v781_v1  ;;  %375 = vmatpush.bf16.msrb.mxu1 %v781_v1 }
  0x10   :  { %442 = vmatpush.bf16.msrb.mxu2 %v781_v1  ;;  %509 = vmatpush.bf16.msrb.mxu3 %v781_v1 }
  0x13   :  { %309 = vmatpush.bf16.msrb.mxu0 %v780_v3  ;;  %376 = vmatpush.bf16.msrb.mxu1 %v780_v3 }
  0x14   :  { %443 = vmatpush.bf16.msrb.mxu2 %v780_v3  ;;  %510 = vmatpush.bf16.msrb.mxu3 %v780_v3 }
  0x17   :  { %576 = vmatpush.bf16.msra.mxu0 %v781_v1 }
  0x1b   :  { %577 = vmatpush.bf16.msra.mxu0 %v780_v3 }
  0x8b   :  { %v75_v7 = vpop.f32.mrf.mxu0  ;;  %v109_v8 = vpop.f32.mrf.mxu1 }
  0x8c   :  { %v76_v9 = vadd.f32 %v810_v6, %v75_v7 }
  0x8e   :  { %79 = vst [vmem:[#allocation2] sm:$0xff] %v76_v9 }
  0x93   :  { %v77_v10 = vpop.f32.mrf.mxu0  ;;  %v111_v11 = vpop.f32.mrf.mxu1 }
  0x95   :  { %v84_v12 = vld [vmem:[#allocation2] sm:$0x1]  ;;  %v159_v40 = vld [vmem:[#allocation2 + $0x1] sm:$0x1]  ;;  %v226_v7 = vld [vmem:[#allocation2 + $0x2] sm:$0x1] }
  0x96   :  { %v113_v13 = vadd.f32 %v109_v8, %v84_v12 }
  0x98   :  { %812 = vtanh.f32 %v113_v13  ;;  %v754_v15 = vmul.f32 -1.442695, %v113_v13 }
  0x9a   :  { %814 = vpow2.f32 %v754_v15 }
  0x9e   :  { %v813_v14 = vpop.eup %812 }
  0x9f   :  { %136 = vrot.lane.b32.xlu0 %v813_v14, %s937_s26 }
  0xa0   :  { %v815_v16 = vpop.eup %814 }
  0xa1   :  { %v117_v17 = vadd.f32 1.0, %v815_v16 }
  0xa3   :  { %816 = vrcp.f32 %v117_v17  ;;  %v129_v23 = vand.u32 2147483648, %v117_v17  ;;  %vm123_vm2 = vweird.f32 %v117_v17  ;;  %v127_v24 = vand.u32 2147483647, %v117_v17 }
  0xa5   :  { %v130_v26 = vor.u32 1.1754944e-38, %v129_v23  ;;  %vm128_vm4 = vcmp.eq.f32.partialorder %v127_v24, 8.507059e+37 }
  0xa9   :  { %v817_v18 = vpop.eup %816 }
  0xaa   :  { %v119_v19 = vmul.f32 %v817_v18, %v117_v17  ;;  %vm124_vm1 = vweird.f32 %v817_v18 }
  0xab   :  { %vm125_vm3 = vmor %vm123_vm2, %vm124_vm1 }
  0xac   :  { %v120_v20 = vsub.f32 1.0, %v119_v19 }
  0xae   :  { %v121_v21 = vmul.f32 %v817_v18, %v120_v20 }
  0xb0   :  { %v122_v22 = vadd.f32 %v817_v18, %v121_v21 }
  0xb2   :  { %v126_v25 = vsel %vm125_vm3, %v817_v18, %v122_v22 }
  0xb3   :  { %v131_v28 = vsel %vm128_vm4, %v130_v26, %v126_v25 }
  0xb4   :  { %v134_v30 = vmul.f32 0.0, %v131_v28 }
 0x111   :  { %v137_v27 = vpop.permute.xlu0 %136 }
 0x112   :  { %v139_v29 = vmul.f32 %v137_v27, %v131_v28 }
 0x114   :  { %141 = vrot.lane.b32.xlu0 %v139_v29, %s940_s0 }
 0x186   :  { %v142_v31 = vpop.permute.xlu0 %141 }
 0x187   :  { %v144_v32 = vadd.f32 %v142_v31, %v134_v30 }
 0x189   :  { %818 = vtanh.f32 %v144_v32 }
 0x18f   :  { %v819_v33 = vpop.eup %818 }
 0x190   :  { %147 = vrot.lane.b32.xlu1 %v819_v33, %s937_s26 }
 0x202   :  { %v148_v34 = vpop.permute.xlu1 %147 }
 0x203   :  { %v998_v35 = vmul.f32 %v148_v34, %v131_v28 }
 0x205   :  { %v151_v36 = vpack.c.bf16 %v998_v35, %v998_v35 }
 0x207   :  { %v161_v37 = vunpack.c.l.b16 %v151_v36 }
 0x209   :  { %v162_v38 = vpack.c.b16 %v161_v37, %v161_v37 }
 0x20b   :  { %163 = vrot.lane.b32.xlu1 %v162_v38, %s940_s0  ;;  %v293_v38 = vld [vmem:[#allocation2 + $0x3] sm:$0x1] }
 0x27d   :  { %v164_v39 = vpop.permute.xlu1 %163 }
 0x27e   :  { %755 = vmatmul.msk.bf16.vlgmr.msra.gmra.mxu2 %vm62_vm0, %v164_v39 }
 0x301   :  { %v177_v41 = vpop.f32.mrf.mxu2 }
 0x302   :  { %v181_v42 = vadd.f32 %v177_v41, %v159_v40 }
 0x304   :  { %820 = vtanh.f32 %v181_v42  ;;  %v756_v45 = vmul.f32 -1.442695, %v181_v42 }
 0x306   :  { %822 = vpow2.f32 %v756_v45 }
 0x309   :  { %v179_v43 = vpop.f32.mrf.mxu2 }
 0x30a   :  { %v821_v44 = vpop.eup %820 }
 0x30b   :  { %204 = vrot.lane.b32.xlu2 %v821_v44, %s937_s26 }
 0x30c   :  { %v823_v46 = vpop.eup %822 }
 0x30d   :  { %v185_v47 = vadd.f32 1.0, %v823_v46 }
 0x30f   :  { %824 = vrcp.f32 %v185_v47  ;;  %v197_v53 = vand.u32 2147483648, %v185_v47  ;;  %vm191_vm6 = vweird.f32 %v185_v47  ;;  %v195_v54 = vand.u32 2147483647, %v185_v47 }
 0x311   :  { %v198_v56 = vor.u32 1.1754944e-38, %v197_v53  ;;  %vm196_vm8 = vcmp.eq.f32.partialorder %v195_v54, 8.507059e+37 }
 0x315   :  { %v825_v48 = vpop.eup %824 }
 0x316   :  { %v187_v49 = vmul.f32 %v825_v48, %v185_v47  ;;  %vm192_vm5 = vweird.f32 %v825_v48 }
 0x317   :  { %vm193_vm7 = vmor %vm191_vm6, %vm192_vm5 }
 0x318   :  { %v188_v50 = vsub.f32 1.0, %v187_v49 }
 0x31a   :  { %v189_v51 = vmul.f32 %v825_v48, %v188_v50 }
 0x31c   :  { %v190_v52 = vadd.f32 %v825_v48, %v189_v51 }
 0x31e   :  { %v194_v55 = vsel %vm193_vm7, %v825_v48, %v190_v52 }
 0x31f   :  { %v199_v58 = vsel %vm196_vm8, %v198_v56, %v194_v55 }
 0x320   :  { %v202_v60 = vmul.f32 %v199_v58, %v144_v32 }
 0x365   :  { %v205_v57 = vpop.permute.xlu2 %204 }
 0x366   :  { %v207_v59 = vmul.f32 %v205_v57, %v199_v58 }
 0x368   :  { %209 = vrot.lane.b32.xlu2 %v207_v59, %s940_s0 }
 0x3c2   :  { %v210_v61 = vpop.permute.xlu2 %209 }
 0x3c3   :  { %v212_v62 = vadd.f32 %v210_v61, %v202_v60 }
 0x3c5   :  { %826 = vtanh.f32 %v212_v62 }
 0x3cb   :  { %v827_v63 = vpop.eup %826 }
 0x3cc   :  { %215 = vrot.lane.b32.xlu0 %v827_v63, %s937_s26 }
 0x43e   :  { %v216_v0 = vpop.permute.xlu0 %215 }
 0x43f   :  { %v1007_v1 = vmul.f32 %v216_v0, %v199_v58 }
 0x441   :  { %v219_v2 = vpack.c.bf16 %v1007_v1, %v1007_v1  ;;  %v790_v5 = vpack.i.bf16 %v1007_v1, %v998_v35 }
 0x443   :  { %v228_v3 = vunpack.c.l.b16 %v219_v2 }
 0x445   :  { %v229_v4 = vpack.c.b16 %v228_v3, %v228_v3 }
 0x447   :  { %230 = vrot.lane.b32.xlu1 %v229_v4, %s940_s0 }
 0x4b9   :  { %v231_v6 = vpop.permute.xlu1 %230 }
 0x4ba   :  { %757 = vmatmul.msk.bf16.vlgmr.msra.gmra.mxu3 %vm62_vm0, %v231_v6 }
 0x53d   :  { %v244_v8 = vpop.f32.mrf.mxu3 }
 0x53e   :  { %v248_v9 = vadd.f32 %v244_v8, %v226_v7  ;;  %v360_v7 = vld [vmem:[#allocation2 + $0x4] sm:$0x1] }
 0x540   :  { %828 = vtanh.f32 %v248_v9  ;;  %v758_v12 = vmul.f32 -1.442695, %v248_v9 }
 0x542   :  { %830 = vpow2.f32 %v758_v12 }
 0x545   :  { %v246_v10 = vpop.f32.mrf.mxu3 }
 0x546   :  { %v829_v11 = vpop.eup %828 }
 0x547   :  { %271 = vrot.lane.b32.xlu2 %v829_v11, %s937_s26 }
 0x548   :  { %v831_v13 = vpop.eup %830 }
 0x549   :  { %v252_v14 = vadd.f32 1.0, %v831_v13 }
 0x54b   :  { %832 = vrcp.f32 %v252_v14  ;;  %v264_v20 = vand.u32 2147483648, %v252_v14  ;;  %vm258_vm10 = vweird.f32 %v252_v14  ;;  %v262_v21 = vand.u32 2147483647, %v252_v14 }
 0x54d   :  { %v265_v23 = vor.u32 1.1754944e-38, %v264_v20  ;;  %vm263_vm12 = vcmp.eq.f32.partialorder %v262_v21, 8.507059e+37 }
 0x551   :  { %v833_v15 = vpop.eup %832 }
 0x552   :  { %v254_v16 = vmul.f32 %v833_v15, %v252_v14  ;;  %vm259_vm9 = vweird.f32 %v833_v15 }
 0x553   :  { %vm260_vm11 = vmor %vm258_vm10, %vm259_vm9 }
 0x554   :  { %v255_v17 = vsub.f32 1.0, %v254_v16 }
 0x556   :  { %v256_v18 = vmul.f32 %v833_v15, %v255_v17 }
 0x558   :  { %v257_v19 = vadd.f32 %v833_v15, %v256_v18 }
 0x55a   :  { %v261_v22 = vsel %vm260_vm11, %v833_v15, %v257_v19 }
 0x55b   :  { %v266_v25 = vsel %vm263_vm12, %v265_v23, %v261_v22 }
 0x55c   :  { %v269_v27 = vmul.f32 %v266_v25, %v212_v62 }
 0x5a1   :  { %v272_v24 = vpop.permute.xlu2 %271 }
 0x5a2   :  { %v274_v26 = vmul.f32 %v272_v24, %v266_v25 }
 0x5a4   :  { %276 = vrot.lane.b32.xlu0 %v274_v26, %s940_s0 }
 0x616   :  { %v277_v28 = vpop.permute.xlu0 %276 }
 0x617   :  { %v279_v29 = vadd.f32 %v277_v28, %v269_v27 }
 0x619   :  { %834 = vtanh.f32 %v279_v29 }
 0x61f   :  { %v835_v30 = vpop.eup %834 }
 0x620   :  { %282 = vrot.lane.b32.xlu1 %v835_v30, %s937_s26 }
 0x692   :  { %v283_v31 = vpop.permute.xlu1 %282 }
 0x693   :  { %v1018_v32 = vmul.f32 %v283_v31, %v266_v25 }
 0x695   :  { %v286_v33 = vpack.c.bf16 %v1018_v32, %v1018_v32 }
 0x697   :  { %v295_v34 = vunpack.c.l.b16 %v286_v33 }
 0x699   :  { %v296_v36 = vpack.c.b16 %v295_v34, %v295_v34 }
 0x69b   :  { %297 = vrot.lane.b32.xlu2 %v296_v36, %s940_s0 }
 0x6f5   :  { %v298_v37 = vpop.permute.xlu2 %297 }
 0x6f6   :  { %759 = vmatmul.msk.bf16.vlgmr.msrb.gmra.mxu0 %vm62_vm0, %v298_v37 }
 0x773   :  { %v311_v39 = vpop.f32.mrf.mxu0 }
 0x774   :  { %v315_v40 = vadd.f32 %v311_v39, %v293_v38  ;;  %v427_v39 = vld [vmem:[#allocation2 + $0x5] sm:$0x1] }
 0x776   :  { %836 = vtanh.f32 %v315_v40  ;;  %v760_v43 = vmul.f32 -1.442695, %v315_v40 }
 0x778   :  { %838 = vpow2.f32 %v760_v43 }
 0x77b   :  { %v313_v41 = vpop.f32.mrf.mxu0 }
 0x77c   :  { %v837_v42 = vpop.eup %836 }
 0x77d   :  { %338 = vrot.lane.b32.xlu0 %v837_v42, %s937_s26 }
 0x77e   :  { %v839_v44 = vpop.eup %838 }
 0x77f   :  { %v319_v45 = vadd.f32 1.0, %v839_v44 }
 0x781   :  { %840 = vrcp.f32 %v319_v45  ;;  %v331_v51 = vand.u32 2147483648, %v319_v45  ;;  %vm325_vm14 = vweird.f32 %v319_v45  ;;  %v329_v52 = vand.u32 2147483647, %v319_v45 }
 0x783   :  { %v332_v54 = vor.u32 1.1754944e-38, %v331_v51  ;;  %vm330_vm1 = vcmp.eq.f32.partialorder %v329_v52, 8.507059e+37 }
 0x787   :  { %v841_v46 = vpop.eup %840 }
 0x788   :  { %v321_v47 = vmul.f32 %v841_v46, %v319_v45  ;;  %vm326_vm13 = vweird.f32 %v841_v46 }
 0x789   :  { %vm327_vm15 = vmor %vm325_vm14, %vm326_vm13 }
 0x78a   :  { %v322_v48 = vsub.f32 1.0, %v321_v47 }
 0x78c   :  { %v323_v49 = vmul.f32 %v841_v46, %v322_v48 }
 0x78e   :  { %v324_v50 = vadd.f32 %v841_v46, %v323_v49 }
 0x790   :  { %v328_v53 = vsel %vm327_vm15, %v841_v46, %v324_v50 }
 0x791   :  { %v333_v56 = vsel %vm330_vm1, %v332_v54, %v328_v53 }
 0x792   :  { %v336_v58 = vmul.f32 %v333_v56, %v279_v29 }
 0x7ef   :  { %v339_v55 = vpop.permute.xlu0 %338 }
 0x7f0   :  { %v341_v57 = vmul.f32 %v339_v55, %v333_v56 }
 0x7f2   :  { %343 = vrot.lane.b32.xlu1 %v341_v57, %s940_s0 }
 0x864   :  { %v344_v59 = vpop.permute.xlu1 %343 }
 0x865   :  { %v346_v60 = vadd.f32 %v344_v59, %v336_v58 }
 0x867   :  { %842 = vtanh.f32 %v346_v60 }
 0x86d   :  { %v843_v61 = vpop.eup %842 }
 0x86e   :  { %349 = vrot.lane.b32.xlu2 %v843_v61, %s937_s26 }
 0x8c8   :  { %v350_v62 = vpop.permute.xlu2 %349 }
 0x8c9   :  { %v1027_v63 = vmul.f32 %v350_v62, %v333_v56 }
 0x8cb   :  { %v353_v0 = vpack.c.bf16 %v1027_v63, %v1027_v63  ;;  %v795_v4 = vpack.i.bf16 %v1027_v63, %v1018_v32  ;;  %v783_v32 = vld [vmem:[%s1109_s4 + $0x8] sm:$0xff] }
 0x8cc   :  { %659 = vmatpush.bf16.msra.mxu1 %v783_v32 }
 0x8cd   :  { %v362_v2 = vunpack.c.l.b16 %v353_v0 }
 0x8cf   :  { %v363_v3 = vpack.c.b16 %v362_v2, %v362_v2 }
 0x8d1   :  { %364 = vrot.lane.b32.xlu0 %v363_v3, %s940_s0 }
 0x943   :  { %v365_v6 = vpop.permute.xlu0 %364 }
 0x944   :  { %761 = vmatmul.msk.bf16.vlgmr.msrb.gmra.mxu1 %vm62_vm0, %v365_v6 }
 0x9c1   :  { %v378_v8 = vpop.f32.mrf.mxu1 }
 0x9c2   :  { %v382_v9 = vadd.f32 %v378_v8, %v360_v7 }
 0x9c4   :  { %844 = vtanh.f32 %v382_v9  ;;  %v762_v12 = vmul.f32 -1.442695, %v382_v9 }
 0x9c6   :  { %846 = vpow2.f32 %v762_v12 }
 0x9c9   :  { %v380_v10 = vpop.f32.mrf.mxu1 }
 0x9ca   :  { %v845_v11 = vpop.eup %844  ;;  %v494_v10 = vld [vmem:[#allocation2 + $0x6] sm:$0x1] }
 0x9cb   :  { %405 = vrot.lane.b32.xlu1 %v845_v11, %s937_s26 }
 0x9cc   :  { %v847_v13 = vpop.eup %846 }
 0x9cd   :  { %v386_v14 = vadd.f32 1.0, %v847_v13 }
 0x9cf   :  { %848 = vrcp.f32 %v386_v14  ;;  %v398_v20 = vand.u32 2147483648, %v386_v14  ;;  %vm392_vm3 = vweird.f32 %v386_v14  ;;  %v396_v21 = vand.u32 2147483647, %v386_v14 }
 0x9d1   :  { %v399_v23 = vor.u32 1.1754944e-38, %v398_v20  ;;  %vm397_vm5 = vcmp.eq.f32.partialorder %v396_v21, 8.507059e+37 }
 0x9d5   :  { %v849_v15 = vpop.eup %848 }
 0x9d6   :  { %v388_v16 = vmul.f32 %v849_v15, %v386_v14  ;;  %vm393_vm2 = vweird.f32 %v849_v15 }
 0x9d7   :  { %vm394_vm4 = vmor %vm392_vm3, %vm393_vm2  ;;  %vm157_vm3 = vcmask 253952  }
 0x9d8   :  { %v389_v17 = vsub.f32 1.0, %v388_v16 }
 0x9da   :  { %v390_v18 = vmul.f32 %v849_v15, %v389_v17 }
 0x9dc   :  { %v391_v19 = vadd.f32 %v849_v15, %v390_v18 }
 0x9de   :  { %v395_v22 = vsel %vm394_vm4, %v849_v15, %v391_v19 }
 0x9df   :  { %v400_v25 = vsel %vm397_vm5, %v399_v23, %v395_v22  ;;  %vm686_vm5 = vcmask 64512  }
 0x9e0   :  { %v403_v27 = vmul.f32 %v400_v25, %v346_v60 }
 0xa3d   :  { %v406_v24 = vpop.permute.xlu1 %405 }
 0xa3e   :  { %v408_v26 = vmul.f32 %v406_v24, %v400_v25 }
 0xa40   :  { %410 = vrot.lane.b32.xlu2 %v408_v26, %s940_s0 }
 0xa9a   :  { %v411_v28 = vpop.permute.xlu2 %410 }
 0xa9b   :  { %v413_v29 = vadd.f32 %v411_v28, %v403_v27 }
 0xa9d   :  { %850 = vtanh.f32 %v413_v29 }
 0xaa3   :  { %v851_v30 = vpop.eup %850 }
 0xaa4   :  { %416 = vrot.lane.b32.xlu0 %v851_v30, %s937_s26 }
 0xb16   :  { %v417_v31 = vpop.permute.xlu0 %416 }
 0xb17   :  { %v1038_v33 = vmul.f32 %v417_v31, %v400_v25 }
 0xb19   :  { %v420_v34 = vpack.c.bf16 %v1038_v33, %v1038_v33 }
 0xb1b   :  { %v429_v36 = vunpack.c.l.b16 %v420_v34 }
 0xb1d   :  { %v430_v37 = vpack.c.b16 %v429_v36, %v429_v36 }
 0xb1f   :  { %431 = vrot.lane.b32.xlu1 %v430_v37, %s940_s0 }
 0xb91   :  { %v432_v38 = vpop.permute.xlu1 %431 }
 0xb92   :  { %763 = vmatmul.msk.bf16.vlgmr.msrb.gmra.mxu2 %vm62_vm0, %v432_v38 }
 0xc15   :  { %v445_v40 = vpop.f32.mrf.mxu2 }
 0xc16   :  { %v449_v41 = vadd.f32 %v445_v40, %v427_v39 }
 0xc18   :  { %852 = vtanh.f32 %v449_v41  ;;  %v764_v44 = vmul.f32 -1.442695, %v449_v41 }
 0xc1a   :  { %854 = vpow2.f32 %v764_v44 }
 0xc1d   :  { %v447_v42 = vpop.f32.mrf.mxu2 }
 0xc1e   :  { %v853_v43 = vpop.eup %852 }
 0xc1f   :  { %472 = vrot.lane.b32.xlu2 %v853_v43, %s937_s26  ;;  %v561_v43 = vld [vmem:[#allocation2 + $0x7] sm:$0x1] }
 0xc20   :  { %v855_v45 = vpop.eup %854 }
 0xc21   :  { %v453_v46 = vadd.f32 1.0, %v855_v45 }
 0xc23   :  { %856 = vrcp.f32 %v453_v46  ;;  %v465_v52 = vand.u32 2147483648, %v453_v46  ;;  %vm459_vm7 = vweird.f32 %v453_v46  ;;  %v463_v53 = vand.u32 2147483647, %v453_v46 }
 0xc25   :  { %v466_v55 = vor.u32 1.1754944e-38, %v465_v52  ;;  %vm464_vm9 = vcmp.eq.f32.partialorder %v463_v53, 8.507059e+37 }
 0xc29   :  { %v857_v47 = vpop.eup %856 }
 0xc2a   :  { %v455_v48 = vmul.f32 %v857_v47, %v453_v46  ;;  %vm460_vm6 = vweird.f32 %v857_v47 }
 0xc2b   :  { %vm461_vm8 = vmor %vm459_vm7, %vm460_vm6 }
 0xc2c   :  { %v456_v49 = vsub.f32 1.0, %v455_v48 }
 0xc2e   :  { %v457_v50 = vmul.f32 %v857_v47, %v456_v49 }
 0xc30   :  { %v458_v51 = vadd.f32 %v857_v47, %v457_v50 }
 0xc32   :  { %v462_v54 = vsel %vm461_vm8, %v857_v47, %v458_v51 }
 0xc33   :  { %v467_v57 = vsel %vm464_vm9, %v466_v55, %v462_v54 }
 0xc34   :  { %v470_v59 = vmul.f32 %v467_v57, %v413_v29 }
 0xc79   :  { %v473_v56 = vpop.permute.xlu2 %472 }
 0xc7a   :  { %v475_v58 = vmul.f32 %v473_v56, %v467_v57 }
 0xc7c   :  { %477 = vrot.lane.b32.xlu0 %v475_v58, %s940_s0 }
 0xcee   :  { %v478_v60 = vpop.permute.xlu0 %477 }
 0xcef   :  { %v480_v61 = vadd.f32 %v478_v60, %v470_v59 }
 0xcf1   :  { %858 = vtanh.f32 %v480_v61 }
 0xcf7   :  { %v859_v62 = vpop.eup %858 }
 0xcf8   :  { %483 = vrot.lane.b32.xlu1 %v859_v62, %s937_s26 }
 0xd6a   :  { %v484_v0 = vpop.permute.xlu1 %483 }
 0xd6b   :  { %v1047_v2 = vmul.f32 %v484_v0, %v467_v57 }
 0xd6d   :  { %v487_v3 = vpack.c.bf16 %v1047_v2, %v1047_v2  ;;  %v800_v8 = vpack.i.bf16 %v1047_v2, %v1038_v33  ;;  %v782_v33 = vld [vmem:[%s1109_s4] sm:$0xff]  ;;  %s941_s4 = smov [#allocation7]  }
 0xd6e   :  { %660 = vmatpush.bf16.msra.mxu1 %v782_v33 }
 0xd6f   :  { %v496_v6 = vunpack.c.l.b16 %v487_v3 }
 0xd71   :  { %v497_v7 = vpack.c.b16 %v496_v6, %v496_v6 }
 0xd73   :  { %498 = vrot.lane.b32.xlu2 %v497_v7, %s940_s0 }
 0xdcd   :  { %v499_v9 = vpop.permute.xlu2 %498 }
 0xdce   :  { %765 = vmatmul.msk.bf16.vlgmr.msrb.gmra.mxu3 %vm62_vm0, %v499_v9 }
 0xe51   :  { %v512_v11 = vpop.f32.mrf.mxu3 }
 0xe52   :  { %v516_v12 = vadd.f32 %v512_v11, %v494_v10 }
 0xe54   :  { %860 = vtanh.f32 %v516_v12  ;;  %v766_v15 = vmul.f32 -1.442695, %v516_v12 }
 0xe56   :  { %862 = vpow2.f32 %v766_v15 }
 0xe59   :  { %v514_v13 = vpop.f32.mrf.mxu3 }
 0xe5a   :  { %v861_v14 = vpop.eup %860 }
 0xe5b   :  { %539 = vrot.lane.b32.xlu0 %v861_v14, %s937_s26 }
 0xe5c   :  { %v863_v16 = vpop.eup %862 }
 0xe5d   :  { %v520_v17 = vadd.f32 1.0, %v863_v16 }
 0xe5f   :  { %864 = vrcp.f32 %v520_v17  ;;  %v532_v23 = vand.u32 2147483648, %v520_v17  ;;  %vm526_vm11 = vweird.f32 %v520_v17  ;;  %v530_v24 = vand.u32 2147483647, %v520_v17 }
 0xe61   :  { %v533_v26 = vor.u32 1.1754944e-38, %v532_v23  ;;  %vm531_vm13 = vcmp.eq.f32.partialorder %v530_v24, 8.507059e+37 }
 0xe65   :  { %v865_v18 = vpop.eup %864 }
 0xe66   :  { %v522_v19 = vmul.f32 %v865_v18, %v520_v17  ;;  %vm527_vm10 = vweird.f32 %v865_v18 }
 0xe67   :  { %vm528_vm12 = vmor %vm526_vm11, %vm527_vm10  ;;  %vm718_vm10 = vcmask 57344  }
 0xe68   :  { %v523_v20 = vsub.f32 1.0, %v522_v19  ;;  %v811_v19 = vld [vmem:[%s1110_s5] ss:$0 sm:$0xff]  ;;  %s725_s5 = sshll.u32 %s941_s4, 4  ;;  %s726_s5 = int_to_ptr.vmem [resolvable:$true] %s725_s5 }
 0xe6a   :  { %v524_v21 = vmul.f32 %v865_v18, %v523_v20 }
 0xe6c   :  { %v525_v22 = vadd.f32 %v865_v18, %v524_v21 }
 0xe6e   :  { %v529_v25 = vsel %vm528_vm12, %v865_v18, %v525_v22 }
 0xe6f   :  { %v534_v28 = vsel %vm531_vm13, %v533_v26, %v529_v25 }
 0xe70   :  { %v537_v30 = vmul.f32 %v534_v28, %v480_v61 }
 0xecd   :  { %v540_v27 = vpop.permute.xlu0 %539 }
 0xece   :  { %v542_v29 = vmul.f32 %v540_v27, %v534_v28 }
 0xed0   :  { %544 = vrot.lane.b32.xlu1 %v542_v29, %s940_s0 }
 0xf42   :  { %v545_v31 = vpop.permute.xlu1 %544 }
 0xf43   :  { %v547_v34 = vadd.f32 %v545_v31, %v537_v30 }
 0xf45   :  { %866 = vtanh.f32 %v547_v34 }
 0xf4b   :  { %v867_v36 = vpop.eup %866 }
 0xf4c   :  { %550 = vrot.lane.b32.xlu2 %v867_v36, %s937_s26 }
 0xfa6   :  { %v551_v37 = vpop.permute.xlu2 %550 }
 0xfa7   :  { %v1058_v38 = vmul.f32 %v551_v37, %v534_v28 }
 0xfa9   :  { %v554_v39 = vpack.c.bf16 %v1058_v38, %v1058_v38 }
 0xfab   :  { %v563_v40 = vunpack.c.l.b16 %v554_v39 }
 0xfad   :  { %v564_v41 = vpack.c.b16 %v563_v40, %v563_v40 }
 0xfaf   :  { %565 = vrot.lane.b32.xlu0 %v564_v41, %s940_s0 }
0x1021   :  { %v566_v42 = vpop.permute.xlu0 %565 }
0x1022   :  { %767 = vmatmul.msk.bf16.vlgmr.msra.gmra.mxu0 %vm62_vm0, %v566_v42 }
0x109f   :  { %v579_v44 = vpop.f32.mrf.mxu0 }
0x10a0   :  { %v583_v45 = vadd.f32 %v579_v44, %v561_v43 }
0x10a2   :  { %868 = vtanh.f32 %v583_v45  ;;  %v768_v48 = vmul.f32 -1.442695, %v583_v45 }
0x10a4   :  { %870 = vpow2.f32 %v768_v48 }
0x10a7   :  { %v581_v46 = vpop.f32.mrf.mxu0 }
0x10a8   :  { %v869_v47 = vpop.eup %868 }
0x10a9   :  { %606 = vrot.lane.b32.xlu1 %v869_v47, %s937_s26 }
0x10aa   :  { %v871_v49 = vpop.eup %870 }
0x10ab   :  { %v587_v50 = vadd.f32 1.0, %v871_v49 }
0x10ad   :  { %872 = vrcp.f32 %v587_v50  ;;  %v599_v56 = vand.u32 2147483648, %v587_v50  ;;  %vm593_vm15 = vweird.f32 %v587_v50  ;;  %v597_v57 = vand.u32 2147483647, %v587_v50 }
0x10af   :  { %v600_v59 = vor.u32 1.1754944e-38, %v599_v56  ;;  %vm598_vm2 = vcmp.eq.f32.partialorder %v597_v57, 8.507059e+37 }
0x10b1   :  { %791 = vrot.lane.b32.xlu1 %v790_v5, %s940_s0 }
0x10b3   :  { %v873_v51 = vpop.eup %872 }
0x10b4   :  { %v589_v52 = vmul.f32 %v873_v51, %v587_v50  ;;  %vm594_vm14 = vweird.f32 %v873_v51 }
0x10b5   :  { %vm595_vm1 = vmor %vm593_vm15, %vm594_vm14 }
0x10b6   :  { %v590_v53 = vsub.f32 1.0, %v589_v52 }
0x10b8   :  { %v591_v54 = vmul.f32 %v873_v51, %v590_v53 }
0x10ba   :  { %v592_v55 = vadd.f32 %v873_v51, %v591_v54 }
0x10bc   :  { %v596_v58 = vsel %vm595_vm1, %v873_v51, %v592_v55 }
0x10bd   :  { %v601_v1 = vsel %vm598_vm2, %v600_v59, %v596_v58 }
0x10be   :  { %v604_v0 = vmul.f32 %v601_v1, %v547_v34 }
0x111b   :  { %v607_v35 = vpop.permute.xlu1 %606 }
0x111c   :  { %v609_v5 = vmul.f32 %v607_v35, %v601_v1 }
0x111e   :  { %611 = vrot.lane.b32.xlu2 %v609_v5, %s940_s0 }
0x1123   :  { %v792_v60 = vpop.permute.xlu1 %791 }
0x1124   :  { %v794_v61 = vunpack.i.h.bf16 %v792_v60  ;;  %v793_v62 = vunpack.i.l.bf16 %v792_v60 }
0x1126   :  { %225 = vst.msk [vmem:[#allocation3 + $0x1] sm:$0x1] %vm157_vm3, %v794_v61  ;;  %796 = vrot.lane.b32.xlu2 %v795_v4, %s940_s0 }
0x1127   :  { %158 = vst.msk [vmem:[#allocation3] sm:$0x1] %vm157_vm3, %v793_v62 }
0x1178   :  { %v612_v3 = vpop.permute.xlu2 %611 }
0x1179   :  { %v614_v6 = vadd.f32 %v612_v3, %v604_v0 }
0x117b   :  { %874 = vtanh.f32 %v614_v6 }
0x1180   :  { %v797_v7 = vpop.permute.xlu2 %796 }
0x1181   :  { %v875_v9 = vpop.eup %874  ;;  %v799_v10 = vunpack.i.h.bf16 %v797_v7  ;;  %v798_v11 = vunpack.i.l.bf16 %v797_v7 }
0x1182   :  { %617 = vrot.lane.b32.xlu0 %v875_v9, %s937_s26 }
0x1183   :  { %359 = vst.msk [vmem:[#allocation3 + $0x3] sm:$0x1] %vm157_vm3, %v799_v10 }
0x1184   :  { %292 = vst.msk [vmem:[#allocation3 + $0x2] sm:$0x1] %vm157_vm3, %v798_v11 }
0x118a   :  { %801 = vrot.lane.b32.xlu0 %v800_v8, %s940_s0 }
0x11f4   :  { %v618_v63 = vpop.permute.xlu0 %617 }
0x11f5   :  { %v620_v4 = vmul.f32 %v618_v63, %v601_v1 }
0x11f7   :  { %v805_v12 = vpack.i.bf16 %v620_v4, %v1058_v38 }
0x11f9   :  { %806 = vrot.lane.b32.xlu1 %v805_v12, %s940_s0 }
0x11fc   :  { %v802_v13 = vpop.permute.xlu0 %801 }
0x11fd   :  { %v804_v14 = vunpack.i.h.bf16 %v802_v13  ;;  %v803_v15 = vunpack.i.l.bf16 %v802_v13 }
0x11ff   :  { %493 = vst.msk [vmem:[#allocation3 + $0x5] sm:$0x1] %vm157_vm3, %v804_v14 }
0x1200   :  { %426 = vst.msk [vmem:[#allocation3 + $0x4] sm:$0x1] %vm157_vm3, %v803_v15 }
0x126b   :  { %v807_v2 = vpop.permute.xlu1 %806 }
0x126c   :  { %v809_v8 = vunpack.i.h.bf16 %v807_v2  ;;  %v808_v16 = vunpack.i.l.bf16 %v807_v2 }
0x126e   :  { %627 = vst.msk [vmem:[#allocation3 + $0x7] sm:$0x1] %vm157_vm3, %v809_v8 }
0x126f   :  { %560 = vst.msk [vmem:[#allocation3 + $0x6] sm:$0x1] %vm157_vm3, %v808_v16 }
0x1276   :  { %v628_v17 = vld [vmem:[#allocation3] sm:$0xff] }
0x1277   :  { %v629_v18 = vpack.c.bf16 %v628_v17, %v628_v17 }
0x1279   :  { %777 = vmatmul.msk.bf16.vlgmr.msra.gmra.mxu1 %vm62_vm0, %v629_v18 }
0x12f6   :  { %v662_v20 = vpop.f32.mrf.mxu1 }
0x12f7   :  { %v663_v21 = vadd.f32 %v811_v19, %v662_v20 }
0x12f9   :  { %v666_v22 = vsub.f32 0.0, %v663_v21 }
0x12fb   :  { %v670_v23 = vand.u32 2147483647, %v666_v22  ;;  %v667_v38 = vmax.f32 %v666_v22, 0.0  ;;  %vm668_vm4 = vcmp.ne.f32.partialorder %v666_v22, %v666_v22 }
0x12fd   :  { %v671_v24 = vsub.f32 0.0, %v670_v23 }
0x12fe   :  { %v664_v25 = vpop.f32.mrf.mxu1 }
0x12ff   :  { %v672_v26 = vmul.f32 1.442695, %v671_v24 }
0x1301   :  { %876 = vpow2.f32 %v672_v26 }
0x1307   :  { %v877_v27 = vpop.eup %876 }
0x1308   :  { %v674_v28 = vadd.f32 1.0, %v877_v27  ;;  %v677_v29 = vmul.f32 -0.5, %v877_v27  ;;  %v680_v31 = vand.u32 2147483647, %v877_v27 }
0x130a   :  { %878 = vlog2.f32 %v674_v28  ;;  %v678_v30 = vadd.f32 1.0, %v677_v29  ;;  %vm681_vm0 = vcmp.lt.f32.partialorder %v680_v31, 0.0004427343 }
0x130c   :  { %v679_v37 = vmul.f32 %v877_v27, %v678_v30 }
0x1310   :  { %v879_v34 = vpop.eup %878 }
0x1311   :  { %v676_v36 = vmul.f32 0.6931472, %v879_v34 }
0x1313   :  { %v682_v39 = vsel %vm681_vm0, %v679_v37, %v676_v36 }
0x1314   :  { %v683_v40 = vadd.f32 %v682_v39, %v667_v38 }
0x1316   :  { %v684_v41 = vsel %vm668_vm4, %v666_v22, %v683_v40 }
0x1317   :  { %v685_v42 = vsub.f32 0.0, %v684_v41 }
0x1319   :  { %v687_v43 = vsel %vm686_vm5, %v685_v42, 0.0 }
0x131a   :  { %v688_v44 = vrot.slane %v687_v43, 4 }
0x131c   :  { %v689_v45 = vadd.f32 %v688_v44, %v687_v43 }
0x131e   :  { %v690_v46 = vrot.slane %v689_v45, 2 }
0x1320   :  { %v691_v47 = vadd.f32 %v690_v46, %v689_v45 }
0x1322   :  { %v692_v48 = vrot.slane %v691_v47, 1 }
0x1324   :  { %v693_v49 = vadd.f32 %v692_v48, %v691_v47 }
0x1326   :  { %v694_v50 = vsel %vm686_vm5, %v693_v49, -inf }
0x1327   :  { %695 = vmax.xlane.f32.xlu2 %v694_v50 }
0x139a   :  { %v696_v51 = vpop.xlane.xlu2 %695 }
0x139b   :  { %v697_v52 = vsub.f32 %v693_v49, %v696_v51 }
0x139d   :  { %v698_v53 = vmul.f32 1.442695, %v697_v52 }
0x139f   :  { %880 = vpow2.f32 %v698_v53 }
0x13a5   :  { %v881_v54 = vpop.eup %880 }
0x13a6   :  { %v700_v55 = vsel %vm686_vm5, %v881_v54, 0.0 }
0x13a7   :  { %701 = vadd.xlane.f32.xlu0 %v700_v55 }
0x141a   :  { %v702_v56 = vpop.xlane.xlu0 %701 }
0x141b   :  { %882 = vrcp.f32 %v702_v56  ;;  %v714_v35 = vand.u32 2147483648, %v702_v56  ;;  %v712_v5 = vand.u32 2147483647, %v702_v56  ;;  %vm708_vm7 = vweird.f32 %v702_v56 }
0x141d   :  { %v715_v61 = vor.u32 1.1754944e-38, %v714_v35  ;;  %vm713_vm9 = vcmp.eq.f32.partialorder %v712_v5, 8.507059e+37 }
0x1421   :  { %v883_v57 = vpop.eup %882 }
0x1422   :  { %v704_v58 = vmul.f32 %v883_v57, %v702_v56  ;;  %vm709_vm6 = vweird.f32 %v883_v57 }
0x1423   :  { %vm710_vm8 = vmor %vm708_vm7, %vm709_vm6 }
0x1424   :  { %v705_v59 = vsub.f32 1.0, %v704_v58 }
0x1426   :  { %v706_v1 = vmul.f32 %v883_v57, %v705_v59 }
0x1428   :  { %v707_v60 = vadd.f32 %v883_v57, %v706_v1 }
0x142a   :  { %v711_v62 = vsel %vm710_vm8, %v883_v57, %v707_v60 }
0x142b   :  { %v716_v0 = vsel %vm713_vm9, %v715_v61, %v711_v62 }
0x142c   :  { %v717_v3 = vmul.f32 %v881_v54, %v716_v0 }
0x142e   :  { %719 = vst.msk [vmem:[#allocation7] sm:$0x1] %vm718_vm10, %v717_v3 }
0x142f   :  { %730 = dma.vmem_to_hbm [thread:$0]  %s726_s5, 16, %s728_s17, [#allocation6]  }
0x1430   :  { %934 = dma.done.wait [#allocation6], 16  }
0x1431   :  { %935 = vsyncadd [#allocation6], 4294967280 }
0x1432   :  { %735 = vsyncpa [#allocation5], 1 }
0x1433   :  { %736 = vsyncpa [#allocation6], 1 }

</bundles_post_ra>
